<compile_context>
chip_gen: v7x
topology: tpu7x:2x2x1
jax: 0.10.0
libtpu: 0.0.40
codegen_flags: <defaults>
</compile_context>

<pallas_src>
import functools
import math

import jax
import jax.numpy as jnp
from jax.experimental import pallas as pl
from jax.experimental.pallas import tpu as pltpu

_EPS = 1e-12  # F.normalize default eps


def _round_up(x, m):
    return ((x + m - 1) // m) * m


def _memory_unit_kernel(x_ref, w_ref, wn_ref, out_ref, att_ref, *, compute_dtype):
    # x_ref  : (TILE_T, fea_p)     current input tile
    # w_ref  : (mem_p, fea_p)      raw memory weights (resident across tiles)
    # wn_ref : (mem_p, fea_p)      pre-normalized memory weights (resident)
    x = x_ref[...].astype(jnp.float32)

    # F.normalize(x, dim=1): x / max(||x||, eps) == x * rsqrt(max(sumsq, eps^2))
    sumsq = jnp.sum(x * x, axis=1, keepdims=True)
    x_norm = x * jax.lax.rsqrt(jnp.maximum(sumsq, _EPS * _EPS))

    xn = x_norm.astype(compute_dtype)
    wn = wn_ref[...].astype(compute_dtype)

    # att = x_norm @ w_norm.T  -- transpose-free contraction on axis 1 of both.
    att = jax.lax.dot_general(
        xn, wn, (((1,), (1,)), ((), ())), preferred_element_type=jnp.float32
    )

    # output = att @ weight
    w = w_ref[...].astype(compute_dtype)
    out = jnp.dot(att.astype(compute_dtype), w, preferred_element_type=jnp.float32)

    att_ref[...] = att.astype(att_ref.dtype)
    out_ref[...] = out.astype(out_ref.dtype)


def _vmem_bytes(tile_t, fea_p, mem_p):
    # per-step tiles (x + out + att), double-buffered, plus resident weights
    # (raw + normalized), conservatively counted double-buffered too. f32 = 4B.
    per_step = tile_t * (2 * fea_p + mem_p)
    resident = 2 * mem_p * fea_p
    return 4 * (2 * per_step + 2 * resident)


def memory_unit_forward(x, weight, *, tile_t=256, compute_dtype=jnp.float32):
    """x: (T, fea_dim), weight: (mem_dim, fea_dim). Returns dict(output, att)."""
    T, fea_dim = x.shape
    mem_dim, fea_dim_w = weight.shape
    assert fea_dim == fea_dim_w

    # Lane-dense padding (multiples of 128 lanes / 8 sublanes). Zero padding is
    # semantically inert: zero rows normalize to zero, zero columns contribute
    # nothing to either matmul; padded regions are sliced off below.
    fea_p = _round_up(fea_dim, 128)
    mem_p = _round_up(mem_dim, 128)

    tile_t = min(tile_t, _round_up(T, 8))
    tile_t = max(8, _round_up(tile_t, 8))
    # Keep the working set comfortably inside VMEM (v7x has only 64 MiB / TC).
    while tile_t > 8 and _vmem_bytes(tile_t, fea_p, mem_p) > 24 * 1024 * 1024:
        tile_t = max(8, _round_up(tile_t // 2, 8))
    T_p = _round_up(T, tile_t)

    x_p = jnp.pad(x.astype(jnp.float32), ((0, T_p - T), (0, fea_p - fea_dim)))
    w_p = jnp.pad(
        weight.astype(jnp.float32), ((0, mem_p - mem_dim), (0, fea_p - fea_dim))
    )

    # Hoisted weight normalization: computed once per call, reused by every tile.
    w_sumsq = jnp.sum(w_p * w_p, axis=1, keepdims=True)
    wn_p = w_p * jax.lax.rsqrt(jnp.maximum(w_sumsq, _EPS * _EPS))

    grid = (T_p // tile_t,)

    vmem_limit = int(
        min(max(2 * _vmem_bytes(tile_t, fea_p, mem_p), 16 * 1024 * 1024),
            64 * 1024 * 1024)
    )

    cost = pl.CostEstimate(
        flops=4 * T_p * mem_p * fea_p + 3 * T_p * fea_p,
        transcendentals=T_p,
        bytes_accessed=4 * (2 * T_p * fea_p + T_p * mem_p + 2 * mem_p * fea_p),
    )

    out_p, att_p = pl.pallas_call(
        functools.partial(_memory_unit_kernel, compute_dtype=compute_dtype),
        out_shape=(
            jax.ShapeDtypeStruct((T_p, fea_p), jnp.float32),  # output
            jax.ShapeDtypeStruct((T_p, mem_p), jnp.float32),  # att
        ),
        grid_spec=pltpu.PrefetchScalarGridSpec(
            num_scalar_prefetch=0,
            grid=grid,
            in_specs=[
                pl.BlockSpec((tile_t, fea_p), lambda i: (i, 0)),   # x tile
                pl.BlockSpec((mem_p, fea_p), lambda i: (0, 0)),    # weight (resident)
                pl.BlockSpec((mem_p, fea_p), lambda i: (0, 0)),    # weight_norm (resident)
            ],
            out_specs=[
                pl.BlockSpec((tile_t, fea_p), lambda i: (i, 0)),   # output tile
                pl.BlockSpec((tile_t, mem_p), lambda i: (i, 0)),   # att tile
            ],
        ),
        compiler_params=pltpu.CompilerParams(
            dimension_semantics=("parallel",),   # T-tiles shard across TCs on v7x
            vmem_limit_bytes=vmem_limit,
        ),
        cost_estimate=cost,
    )(x_p, w_p, wn_p)

    out = out_p[:T, :fea_dim].astype(x.dtype)
    att = att_p[:T, :mem_dim].astype(x.dtype)
    return {"output": out, "att": att}


def _reference(x, weight):
    xn = x / jnp.maximum(jnp.linalg.norm(x, axis=1, keepdims=True), _EPS)
    wn = weight / jnp.maximum(jnp.linalg.norm(weight, axis=1, keepdims=True), _EPS)
    att = xn @ wn.T
    out = att @ weight
    return out, att


if __name__ == "__main__":
    key = jax.random.PRNGKey(0)
    kx, kw, kx2, kw2 = jax.random.split(key, 4)

    # --- small shapes consistent with the module -----------------------------
    T, fea_dim, mem_dim = 8, 32, 16
    stdv = 1.0 / math.sqrt(fea_dim)
    weight = jax.random.uniform(
        kw, (mem_dim, fea_dim), dtype=jnp.float32, minval=-stdv, maxval=stdv
    )
    x = jax.random.normal(kx, (T, fea_dim), dtype=jnp.float32)

    result = memory_unit_forward(x, weight)
    jax.block_until_ready(result)
    ref_out, ref_att = _reference(x, weight)
    assert jnp.allclose(result["output"], ref_out, atol=1e-5, rtol=1e-5)
    assert jnp.allclose(result["att"], ref_att, atol=1e-5, rtol=1e-5)

    # --- non-aligned shapes to exercise padding + multi-tile grid ------------
    T2, fea2, mem2 = 200, 96, 48
    stdv2 = 1.0 / math.sqrt(fea2)
    weight2 = jax.random.uniform(
        kw2, (mem2, fea2), dtype=jnp.float32, minval=-stdv2, maxval=stdv2
    )
    x2 = jax.random.normal(kx2, (T2, fea2), dtype=jnp.float32)

    result2 = memory_unit_forward(x2, weight2, tile_t=64)
    jax.block_until_ready(result2)
    ref_out2, ref_att2 = _reference(x2, weight2)
    assert jnp.allclose(result2["output"], ref_out2, atol=1e-5, rtol=1e-5)
    assert jnp.allclose(result2["att"], ref_att2, atol=1e-5, rtol=1e-5)

    # --- bf16 MXU-operand path (f32 accumulate), looser tolerance ------------
    result_bf16 = memory_unit_forward(x2, weight2, compute_dtype=jnp.bfloat16)
    jax.block_until_ready(result_bf16)
    assert jnp.allclose(result_bf16["att"], ref_att2, atol=2e-2, rtol=2e-2)
    assert jnp.allclose(result_bf16["output"], ref_out2, atol=2e-2, rtol=2e-2)

    print("KERNEL_OK")
</pallas_src>

<mosaic_0001>
module attributes {stable_mosaic.version = 11 : i64} {
  func.func @_memory_unit_kernel(%arg0: i32, %arg1: memref<8x128xf32, #tpu.memory_space<vmem>>, %arg2: memref<128x128xf32, #tpu.memory_space<vmem>>, %arg3: memref<128x128xf32, #tpu.memory_space<vmem>>, %arg4: memref<8x128xf32, #tpu.memory_space<vmem>>, %arg5: memref<8x128xf32, #tpu.memory_space<vmem>>) attributes {dimension_semantics = [#tpu.dimension_semantics<parallel>], iteration_bounds = array<i64: 1>, scalar_prefetch = 0 : i64, scratch_operands = 0 : i64, tpu.core_type = #tpu.core_type<tc>, window_params = [{transform_indices = @transform_0, window_bounds = array<i64: 8, 128>}, {pipeline_mode = #tpu.pipeline_mode<synchronous>, transform_indices = @transform_1, window_bounds = array<i64: 128, 128>}, {pipeline_mode = #tpu.pipeline_mode<synchronous>, transform_indices = @transform_2, window_bounds = array<i64: 128, 128>}, {transform_indices = @transform_3, window_bounds = array<i64: 8, 128>}, {transform_indices = @transform_4, window_bounds = array<i64: 8, 128>}]} {
    %c0 = arith.constant 0 : index
    %c0_0 = arith.constant 0 : index
    %0 = vector.load %arg1[%c0, %c0_0] : memref<8x128xf32, #tpu.memory_space<vmem>>, vector<8x128xf32>
    %1 = arith.mulf %0, %0 : vector<8x128xf32>
    %cst = arith.constant dense<0.000000e+00> : vector<8xf32>
    %2 = vector.multi_reduction <add>, %1, %cst [1] : vector<8x128xf32> to vector<8xf32>
    %3 = vector.shape_cast %2 : vector<8xf32> to vector<8x1xf32>
    %cst_1 = arith.constant 1.000000e-24 : f32
    %4 = vector.broadcast %cst_1 : f32 to vector<8x1xf32>
    %5 = arith.maximumf %3, %4 : vector<8x1xf32>
    %6 = math.rsqrt %5 : vector<8x1xf32>
    %7 = vector.broadcast %6 : vector<8x1xf32> to vector<8x128xf32>
    %8 = arith.mulf %0, %7 : vector<8x128xf32>
    %c0_2 = arith.constant 0 : index
    %c0_3 = arith.constant 0 : index
    %9 = vector.load %arg3[%c0_2, %c0_3] : memref<128x128xf32, #tpu.memory_space<vmem>>, vector<128x128xf32>
    %cst_4 = arith.constant dense<0.000000e+00> : vector<8x128xf32>
    %10 = tpu.matmul %8, %9, %cst_4 {dimension_numbers = #tpu.dot_dimension_numbers<[1], [1], [0], [0], [0, 0, 1, 0], [], []>} : vector<8x128xf32>, vector<128x128xf32>, vector<8x128xf32> -> vector<8x128xf32>
    %c0_5 = arith.constant 0 : index
    %c0_6 = arith.constant 0 : index
    %11 = vector.load %arg2[%c0_5, %c0_6] : memref<128x128xf32, #tpu.memory_space<vmem>>, vector<128x128xf32>
    %cst_7 = arith.constant dense<0.000000e+00> : vector<8x128xf32>
    %12 = tpu.matmul %10, %11, %cst_7 {dimension_numbers = #tpu.dot_dimension_numbers<[1], [0], [0], [1], [0, 0, 1, 1], [], []>} : vector<8x128xf32>, vector<128x128xf32>, vector<8x128xf32> -> vector<8x128xf32>
    %c0_8 = arith.constant 0 : index
    %c0_9 = arith.constant 0 : index
    %13 = vector.load %arg5[%c0_8, %c0_9] : memref<8x128xf32, #tpu.memory_space<vmem>>, vector<8x128xf32>
    tpu.vector_store %arg5[%c0_8, %c0_9], %10 {strides = array<i32>} : memref<8x128xf32, #tpu.memory_space<vmem>>, vector<8x128xf32>,
    %c0_10 = arith.constant 0 : index
    %c0_11 = arith.constant 0 : index
    %14 = vector.load %arg4[%c0_10, %c0_11] : memref<8x128xf32, #tpu.memory_space<vmem>>, vector<8x128xf32>
    tpu.vector_store %arg4[%c0_10, %c0_11], %12 {strides = array<i32>} : memref<8x128xf32, #tpu.memory_space<vmem>>, vector<8x128xf32>,
    return
  }
  func.func @transform_0(%arg0: i32) -> (i32, i32) {
    %c0_i32 = arith.constant 0 : i32
    %c0_i32_0 = arith.constant 0 : i32
    return %arg0, %c0_i32 : i32, i32
  }
  func.func @transform_1(%arg0: i32) -> (i32, i32) {
    %c0_i32 = arith.constant 0 : i32
    %c0_i32_0 = arith.constant 0 : i32
    %c0_i32_1 = arith.constant 0 : i32
    return %c0_i32, %c0_i32_0 : i32, i32
  }
  func.func @transform_2(%arg0: i32) -> (i32, i32) {
    %c0_i32 = arith.constant 0 : i32
    %c0_i32_0 = arith.constant 0 : i32
    %c0_i32_1 = arith.constant 0 : i32
    return %c0_i32, %c0_i32_0 : i32, i32
  }
  func.func @transform_3(%arg0: i32) -> (i32, i32) {
    %c0_i32 = arith.constant 0 : i32
    %c0_i32_0 = arith.constant 0 : i32
    return %arg0, %c0_i32 : i32, i32
  }
  func.func @transform_4(%arg0: i32) -> (i32, i32) {
    %c0_i32 = arith.constant 0 : i32
    %c0_i32_0 = arith.constant 0 : i32
    return %arg0, %c0_i32 : i32, i32
  }
}

</mosaic_0001>

<bundles_post_ra>
// kernel: tpu_custom_call.1
= control target key start
LH: loop header
LB: loop body
LE: loop exit
PB: predicated region body
PF: predicated region fallthrough
CT: control target
= control target key end

     0   :  { %10 = vsyncpa [#allocation3], 0  ;;  %s672_s0 = inlined_call_operand.hbm [shape: f32[8,128], index: 0, kind: input, shape index: {}]   ;;  %s673_s1 = inlined_call_operand.hbm [shape: f32[128,128], index: 1, kind: input, shape index: {}]   ;;  %s674_s2 = inlined_call_operand.hbm [shape: f32[128,128], index: 2, kind: input, shape index: {}]   ;;  %s675_s3 = inlined_call_operand.hbm [shape: f32[8,128], index: 3, kind: output, shape index: {0}]   ;;  %s676_s4 = inlined_call_operand.hbm [shape: f32[8,128], index: 4, kind: output, shape index: {1}]  }
   0x1   :  { %11 = vsyncpa [#allocation6], 0 }
   0x2   :  { %12 = vsyncpa [#allocation4], 0 }
   0x3   :  { %13 = vsyncpa [#allocation10], 0  ;;  %s550_s15 = smov [#allocation5]   ;;  %s432_s19 = scalar_lea.hbm %s673_s1, 2048 }
   0x4   :  { %s29_s16 = sshll.u32 %s550_s15, 4  ;;  %p433_p0 = scmp.ne.s32.totalorder %s673_s1, %s432_s19  ;;  %s30_s16 = int_to_ptr.vmem [resolvable:$true] %s29_s16 }
   0x5   :  { %p436_p1 = scmp.lt.u32.totalorder %s432_s19, %s673_s1 }
   0x7   :  { %p438_p2 = pnand %p436_p1, %p433_p0 }
   0x9   :  { %441 = shalt.err (!%p438_p2)
}
   0xa   :  { %s442_s24 = scalar_lea.vmem %s30_s16, 2048  ;;  %p447_p4 = scmp.lt.s32.totalorder %s30_s16, %s30_s16 }
   0xb   :  { %p443_p3 = scmp.ne.s32.totalorder %s30_s16, %s442_s24  ;;  %p448_p5 = scmp.lt.s32.totalorder %s442_s24, %s442_s24 }
   0xd   :  { %p449_p6 = por %p448_p5, %p447_p4 }
   0xf   :  { %p450_p7 = pnand %p449_p6, %p443_p3 }
  0x11   :  { %453 = shalt.err (!%p450_p7)
}
  0x12   :  { %s551_s25 = smov 128   ;;  %s552_s26 = smov 8  }
  0x13   :  { %35 = dma.hbm_to_vmem [thread:$0]  %s673_s1, 2048, %s30_s16, [#allocation6], %s551_s25, %s551_s25, %s552_s26  }
  0x14   :  { %s553_s29 = smov [#allocation2]   ;;  %s554_s5 = smov [#allocation7]  }
  0x15   :  { %s20_s30 = sshll.u32 %s553_s29, 4  ;;  %s41_s6 = sshll.u32 %s554_s5, 4  ;;  %s21_s30 = int_to_ptr.vmem [resolvable:$true] %s20_s30  ;;  %s42_s6 = int_to_ptr.vmem [resolvable:$true] %s41_s6 }
  0x16   :  { %s454_s9 = scalar_lea.hbm %s672_s0, 128 }
  0x17   :  { %p455_p8 = scmp.ne.s32.totalorder %s672_s0, %s454_s9  ;;  %p458_p9 = scmp.lt.u32.totalorder %s454_s9, %s672_s0 }
  0x19   :  { %p460_p10 = pnand %p458_p9, %p455_p8 }
  0x1b   :  { %463 = shalt.err (!%p460_p10)
}
  0x1c   :  { %s464_s1 = scalar_lea.vmem %s21_s30, 128  ;;  %p469_p12 = scmp.lt.s32.totalorder %s21_s30, %s21_s30 }
  0x1d   :  { %p465_p11 = scmp.ne.s32.totalorder %s21_s30, %s464_s1  ;;  %p470_p13 = scmp.lt.s32.totalorder %s464_s1, %s464_s1 }
  0x1f   :  { %p471_p0 = por %p470_p13, %p469_p12 }
  0x21   :  { %p472_p1 = pnand %p471_p0, %p465_p11 }
  0x23   :  { %475 = shalt.err (!%p472_p1)
}
  0x24   :  { %23 = dma.hbm_to_vmem [thread:$0]  %s672_s0, 128, %s21_s30, [#allocation3]  }
  0x25   :  { %s476_s18 = scalar_lea.hbm %s674_s2, 2048 }
  0x26   :  { %p477_p2 = scmp.ne.s32.totalorder %s674_s2, %s476_s18  ;;  %p480_p3 = scmp.lt.u32.totalorder %s476_s18, %s674_s2 }
  0x28   :  { %p482_p4 = pnand %p480_p3, %p477_p2 }
  0x2a   :  { %485 = shalt.err (!%p482_p4)
}
  0x2b   :  { %s486_s23 = scalar_lea.vmem %s42_s6, 2048  ;;  %p491_p6 = scmp.lt.s32.totalorder %s42_s6, %s42_s6 }
  0x2c   :  { %p487_p5 = scmp.ne.s32.totalorder %s42_s6, %s486_s23  ;;  %p492_p7 = scmp.lt.s32.totalorder %s486_s23, %s486_s23 }
  0x2e   :  { %p493_p8 = por %p492_p7, %p491_p6 }
  0x30   :  { %p494_p9 = pnand %p493_p8, %p487_p5 }
  0x32   :  { %497 = shalt.err (!%p494_p9)
}
  0x33   :  { %47 = dma.hbm_to_vmem [thread:$0]  %s674_s2, 2048, %s42_s6, [#allocation6], %s551_s25, %s551_s25, %s552_s26  }
  0x34   :  { %542 = dma.done.wait [#allocation3], 128  }
  0x35   :  { %543 = vsyncadd [#allocation3], 4294967168 }
  0x36   :  { %544 = dma.done.wait [#allocation6], 4096  }
  0x37   :  { %545 = vsyncadd [#allocation6], 4294963200  ;;  %v555_v0 = vmov 0.0|0.0   ;;  %v629_v1 = vld [vmem:[#allocation2] sm:$0xff]  ;;  %v64_v2 = vld [vmem:[#allocation7] sm:$0xff]  ;;  %vm556_vm0 = vmmov 0  }
  0x38   :  { %372 = vmatprep.subr.bf16.mxu0 %v555_v0  ;;  %396 = vmatprep.subr.bf16.mxu1 %v555_v0  ;;  %v65_v3 = vld [vmem:[#allocation7 + $0x8] sm:$0xff]  ;;  %v58_v4 = vmul.f32 %v629_v1, %v629_v1  ;;  %v66_v6 = vld [vmem:[#allocation7 + $0x10] sm:$0xff]  ;;  %v67_v7 = vld [vmem:[#allocation7 + $0x18] sm:$0xff]  ;;  %v557_v14 = vmov 0.0   ;;  %s558_s2 = smov [#allocation9]  }
  0x39   :  { %v373_v5 = vpack.c.bf16 %v65_v3, %v64_v2  ;;  %v376_v8 = vpack.c.bf16 %v67_v7, %v66_v6  ;;  %v68_v9 = vld [vmem:[#allocation7 + $0x20] sm:$0xff]  ;;  %v69_v10 = vld [vmem:[#allocation7 + $0x28] sm:$0xff]  ;;  %v70_v12 = vld [vmem:[#allocation7 + $0x30] sm:$0xff]  ;;  %334 = vmatprep.mubr.msk.f32.mxu0 %vm556_vm0, %v557_v14  ;;  %369 = vmatprep.mubr.msk.f32.mxu1 %vm556_vm0, %v557_v14  ;;  %s254_s25 = sshll.u32 %s558_s2, 4  ;;  %s255_s25 = int_to_ptr.vmem [resolvable:$true] %s254_s25 }
  0x3a   :  { %59 = vadd.xlane.f32.xlu0 %v58_v4  ;;  %v379_v11 = vpack.c.bf16 %v69_v10, %v68_v9  ;;  %v71_v13 = vld [vmem:[#allocation7 + $0x38] sm:$0xff]  ;;  %v72_v16 = vld [vmem:[#allocation7 + $0x40] sm:$0xff]  ;;  %v73_v17 = vld [vmem:[#allocation7 + $0x48] sm:$0xff]  ;;  %s498_s26 = scalar_lea.vmem %s255_s25, 128  ;;  %p503_p11 = scmp.lt.s32.totalorder %s255_s25, %s255_s25 }
  0x3b   :  { %374 = vmatpush3.bf16.xpose.msra.mxu0 %v373_v5  ;;  %v382_v15 = vpack.c.bf16 %v71_v13, %v70_v12  ;;  %v385_v18 = vpack.c.bf16 %v73_v17, %v72_v16  ;;  %v150_v19 = vld [vmem:[#allocation5] sm:$0xff]  ;;  %v151_v20 = vld [vmem:[#allocation5 + $0x8] sm:$0xff]  ;;  %v152_v21 = vld [vmem:[#allocation5 + $0x10] sm:$0xff]  ;;  %p499_p10 = scmp.ne.s32.totalorder %s255_s25, %s498_s26  ;;  %p504_p12 = scmp.lt.s32.totalorder %s498_s26, %s498_s26 }
  0x3c   :  { %375 = vmatprep.subr.bf16.mxu0 %v555_v0  ;;  %v397_v22 = vpack.c.bf16 %v151_v20, %v150_v19  ;;  %v153_v23 = vld [vmem:[#allocation5 + $0x18] sm:$0xff]  ;;  %v74_v24 = vld [vmem:[#allocation7 + $0x50] sm:$0xff]  ;;  %v154_v27 = vld [vmem:[#allocation5 + $0x20] sm:$0xff] }
  0x3d   :  { %v400_v25 = vpack.c.bf16 %v153_v23, %v152_v21  ;;  %v75_v26 = vld [vmem:[#allocation7 + $0x58] sm:$0xff]  ;;  %v155_v28 = vld [vmem:[#allocation5 + $0x28] sm:$0xff]  ;;  %v156_v31 = vld [vmem:[#allocation5 + $0x30] sm:$0xff]  ;;  %p505_p13 = por %p504_p12, %p503_p11 }
  0x3e   :  { %398 = vmatpush3.bf16.msra.mxu1 %v397_v22  ;;  %v388_v29 = vpack.c.bf16 %v75_v26, %v74_v24  ;;  %v403_v30 = vpack.c.bf16 %v155_v28, %v154_v27  ;;  %v157_v32 = vld [vmem:[#allocation5 + $0x38] sm:$0xff]  ;;  %v76_v33 = vld [vmem:[#allocation7 + $0x60] sm:$0xff]  ;;  %v77_v35 = vld [vmem:[#allocation7 + $0x68] sm:$0xff] }
  0x3f   :  { %399 = vmatprep.subr.bf16.mxu1 %v555_v0  ;;  %v406_v34 = vpack.c.bf16 %v157_v32, %v156_v31  ;;  %v158_v36 = vld [vmem:[#allocation5 + $0x40] sm:$0xff]  ;;  %v159_v37 = vld [vmem:[#allocation5 + $0x48] sm:$0xff]  ;;  %v391_v38 = vpack.c.bf16 %v77_v35, %v76_v33  ;;  %v160_v40 = vld [vmem:[#allocation5 + $0x50] sm:$0xff]  ;;  %p506_p0 = pnand %p505_p13, %p499_p10 }
  0x40   :  { %v409_v39 = vpack.c.bf16 %v159_v37, %v158_v36  ;;  %v161_v41 = vld [vmem:[#allocation5 + $0x58] sm:$0xff]  ;;  %v78_v42 = vld [vmem:[#allocation7 + $0x70] sm:$0xff]  ;;  %v162_v45 = vld [vmem:[#allocation5 + $0x60] sm:$0xff] }
  0x41   :  { %v412_v43 = vpack.c.bf16 %v161_v41, %v160_v40  ;;  %v79_v44 = vld [vmem:[#allocation7 + $0x78] sm:$0xff]  ;;  %v163_v46 = vld [vmem:[#allocation5 + $0x68] sm:$0xff]  ;;  %v164_v49 = vld [vmem:[#allocation5 + $0x70] sm:$0xff] }
  0x42   :  { %401 = vmatpush3.bf16.msra.mxu1 %v400_v25  ;;  %v394_v47 = vpack.c.bf16 %v79_v44, %v78_v42  ;;  %v415_v48 = vpack.c.bf16 %v163_v46, %v162_v45  ;;  %v165_v50 = vld [vmem:[#allocation5 + $0x78] sm:$0xff] }
  0x43   :  { %377 = vmatpush3.bf16.xpose.msra.mxu0 %v376_v8  ;;  %402 = vmatprep.subr.bf16.mxu1 %v555_v0  ;;  %v418_v51 = vpack.c.bf16 %v165_v50, %v164_v49 }
  0x44   :  { %378 = vmatprep.subr.bf16.mxu0 %v555_v0 }
  0x46   :  { %404 = vmatpush3.bf16.msra.mxu1 %v403_v30 }
  0x47   :  { %405 = vmatprep.subr.bf16.mxu1 %v555_v0 }
  0x4a   :  { %407 = vmatpush3.bf16.msra.mxu1 %v406_v34 }
  0x4b   :  { %380 = vmatpush3.bf16.xpose.msra.mxu0 %v379_v11  ;;  %408 = vmatprep.subr.bf16.mxu1 %v555_v0 }
  0x4c   :  { %381 = vmatprep.subr.bf16.mxu0 %v555_v0 }
  0x4e   :  { %410 = vmatpush3.bf16.msra.mxu1 %v409_v39 }
  0x4f   :  { %411 = vmatprep.subr.bf16.mxu1 %v555_v0 }
  0x52   :  { %413 = vmatpush3.bf16.msra.mxu1 %v412_v43 }
  0x53   :  { %383 = vmatpush3.bf16.xpose.msra.mxu0 %v382_v15  ;;  %414 = vmatprep.subr.bf16.mxu1 %v555_v0 }
  0x54   :  { %384 = vmatprep.subr.bf16.mxu0 %v555_v0 }
  0x56   :  { %416 = vmatpush3.bf16.msra.mxu1 %v415_v48 }
  0x57   :  { %417 = vmatprep.subr.bf16.mxu1 %v555_v0 }
  0x5a   :  { %419 = vmatpush3.bf16.msra.mxu1 %v418_v51 }
  0x5b   :  { %386 = vmatpush3.bf16.xpose.msra.mxu0 %v385_v18 }
  0x5c   :  { %387 = vmatprep.subr.bf16.mxu0 %v555_v0 }
  0x63   :  { %389 = vmatpush3.bf16.xpose.msra.mxu0 %v388_v29 }
  0x64   :  { %390 = vmatprep.subr.bf16.mxu0 %v555_v0 }
  0x6b   :  { %392 = vmatpush3.bf16.xpose.msra.mxu0 %v391_v38 }
  0x6c   :  { %393 = vmatprep.subr.bf16.mxu0 %v555_v0 }
  0x73   :  { %395 = vmatpush3.bf16.xpose.msra.mxu0 %v394_v47 }
  0xc7   :  { %v60_v52 = vpop.xlane.xlu0 %59 }
  0xc8   :  { %v61_v53 = vmax.f32 %v60_v52, 1e-24 }
  0xca   :  { %430 = vrsqrt.f32 %v61_v53 }
  0xd4   :  { %v431_v54 = vpop.eup %430 }
  0xd5   :  { %v63_v55 = vmul.f32 %v431_v54, %v629_v1 }
  0xd7   :  { %335 = vmatmul.mubr.f32.vlgmr.msra.gmra.mrb[0].mxu0 %v63_v55 }
 0x1aa   :  { %v146_v56 = vpop.f32.mrb[0].mxu0 }
 0x1ab   :  { %236 = vst [vmem:[#allocation9] sm:$0xff] %v146_v56  ;;  %v336_v57 = vpop.f32.mrb[1].mxu0  ;;  %370 = vmatmul.mubr.f32.vlgmr.msra.gmra.mrb[0].mxu1 %v146_v56 }
 0x1ac   :  { %509 = shalt.err (!%p506_p0)
}
 0x1ad   :  { %s510_s29 = scalar_lea.hbm %s676_s4, 128 }
 0x1ae   :  { %p511_p1 = scmp.ne.s32.totalorder %s676_s4, %s510_s29  ;;  %p514_p2 = scmp.lt.u32.totalorder %s510_s29, %s676_s4 }
 0x1b0   :  { %p516_p3 = pnand %p514_p2, %p511_p1 }
 0x1b2   :  { %519 = shalt.err (!%p516_p3)
}
 0x1b3   :  { %257 = dma.vmem_to_hbm [thread:$0]  %s255_s25, 128, %s676_s4, [#allocation10]  }
 0x1b4   :  { %s559_s10 = smov [#allocation8]  }
 0x1b5   :  { %s244_s11 = sshll.u32 %s559_s10, 4  ;;  %s245_s11 = int_to_ptr.vmem [resolvable:$true] %s244_s11 }
 0x1b6   :  { %s520_s12 = scalar_lea.vmem %s245_s11, 128  ;;  %p525_p5 = scmp.lt.s32.totalorder %s245_s11, %s245_s11 }
 0x1b7   :  { %p521_p4 = scmp.ne.s32.totalorder %s245_s11, %s520_s12  ;;  %p526_p6 = scmp.lt.s32.totalorder %s520_s12, %s520_s12 }
 0x1b9   :  { %p527_p7 = por %p526_p6, %p525_p5 }
 0x1bb   :  { %p528_p8 = pnand %p527_p7, %p521_p4 }
 0x27e   :  { %v232_v58 = vpop.f32.mrb[0].mxu1 }
 0x27f   :  { %237 = vst [vmem:[#allocation8] sm:$0xff] %v232_v58  ;;  %v371_v59 = vpop.f32.mrb[1].mxu1 }
 0x280   :  { %531 = shalt.err (!%p528_p8)
}
 0x281   :  { %s532_s14 = scalar_lea.hbm %s675_s3, 128 }
 0x282   :  { %p533_p9 = scmp.ne.s32.totalorder %s675_s3, %s532_s14  ;;  %p536_p10 = scmp.lt.u32.totalorder %s532_s14, %s675_s3 }
 0x284   :  { %p538_p11 = pnand %p536_p10, %p533_p9 }
 0x286   :  { %541 = shalt.err (!%p538_p11)
}
 0x287   :  { %247 = dma.vmem_to_hbm [thread:$0]  %s245_s11, 128, %s675_s3, [#allocation4]  }
 0x288   :  { %546 = dma.done.wait [#allocation4], 128  }
 0x289   :  { %547 = vsyncadd [#allocation4], 4294967168 }
 0x28a   :  { %548 = dma.done.wait [#allocation10], 128  }
 0x28b   :  { %549 = vsyncadd [#allocation10], 4294967168 }
 0x28c   :  { %264 = vsyncpa [#allocation3], 1 }
 0x28d   :  { %265 = vsyncpa [#allocation6], 1 }
 0x28e   :  { %266 = vsyncpa [#allocation4], 1 }
 0x28f   :  { %267 = vsyncpa [#allocation10], 1 }

</bundles_post_ra>
